<compile_context>
chip_gen: v7x
topology: tpu7x:2x2x1
jax: 0.10.0
libtpu: 0.0.40
codegen_flags: <defaults>
</compile_context>

<pallas_src>
import functools

import jax
import jax.numpy as jnp
from jax.experimental import pallas as pl
from jax.experimental.pallas import tpu as pltpu


def _round_up(x, m):
    return (x + m - 1) // m * m


def _mlp_kernel(n_linear, *refs):
    """Fused MLP forward over one packed row tile.

    refs layout:
      x_ref                    # (TILE_P, pack*in_dim) bf16 packed input tile
      (w_i, b_i) * n_linear    # block-diag hidden weights (bf16) + tiled biases (f32)
      w_out1, b_out1           # block-diag Linear(in_dim, 32): (pack*in_dim, pack*32)
      w_out2, b_out2           # block-diag Linear(32, 1):      (pack*32, pack)
      o_ref                    # (TILE_P, pack) f32 packed output tile
    """
    x_ref = refs[0]
    o_ref = refs[-1]
    params = refs[1:-1]

    h = x_ref[...]                                       # bf16, no cast needed

    # Hidden layers: Linear + ReLU.  Statically unrolled (n_linear is Python int).
    for i in range(n_linear):
        w = params[2 * i][...]                           # bf16 block-diag
        b = params[2 * i + 1][...]                       # f32 (1, pack*in_dim) row
        a = jnp.dot(h, w, preferred_element_type=jnp.float32) + b
        h = jnp.maximum(a, 0.0).astype(jnp.bfloat16)     # back to bf16 for next MXU pass

    # out_1: Linear(in_dim, 32) + ReLU (packed).
    w1 = params[2 * n_linear][...]
    b1 = params[2 * n_linear + 1][...]
    a = jnp.dot(h, w1, preferred_element_type=jnp.float32) + b1
    h = jnp.maximum(a, 0.0).astype(jnp.bfloat16)

    # out_2: Linear(32, 1) as a block-diag (pack*32, pack) matmul.  Result
    # (TILE_P, pack) is the packed layout of the module's (1, N) output.
    w2 = params[2 * n_linear + 2][...]
    b2 = params[2 * n_linear + 3][...]
    out = jnp.dot(h, w2, preferred_element_type=jnp.float32) + b2
    o_ref[...] = out.astype(o_ref.dtype)


def mlp_forward(x, lin_weights, lin_biases, w_out1, b_out1, w_out2, b_out2,
                *, target_tile_rows=8192, lanes=128):
    """x: (N, in_dim) f32.  Weights pre-transposed to (fan_in, fan_out).
    Returns (1, N) f32, matching MLP.forward's reshape(1, -1)."""
    n_linear = len(lin_weights)
    N, in_dim = x.shape

    # Lane packing factor: put `pack` consecutive feature-rows side by side
    # along the lane dimension (128 lanes for in_dim=32 -> pack=4).
    pack = lanes // in_dim if (in_dim <= lanes and lanes % in_dim == 0) else 1

    # Tile selection in *packed* rows.
    P = -(-N // pack)                                    # packed rows needed
    if P < 64:
        tile_p = _round_up(max(P, 8), 8)                 # tiny: single tile
    else:
        # >= 2 grid steps (v7x megacore), capped for overhead amortization.
        tile_p = min(max(target_tile_rows // pack, 8), _round_up(-(-P // 2), 8))
    P_pad = _round_up(P, tile_p)
    grid = (P_pad // tile_p,)

    # Pack + pad x; cast the big streamed operand to bf16 in the wrapper.
    n_rows_pad = P_pad * pack
    if n_rows_pad != N:
        x = jnp.pad(x, ((0, n_rows_pad - N), (0, 0)))
    xp = x.astype(jnp.bfloat16).reshape(P_pad, pack * in_dim)

    # Block-diagonal (packed) parameters: weights bf16, biases f32 rows.
    eye = jnp.eye(pack, dtype=jnp.float32)

    def pack_w(w):                                       # (f_in, f_out) -> kron(I, W)
        return jnp.kron(eye, w).astype(jnp.bfloat16)

    def pack_b(b):
        return jnp.tile(b.reshape(1, -1), (1, pack)).astype(jnp.float32)

    args = [xp]
    for w, b in zip(lin_weights, lin_biases):
        args += [pack_w(w), pack_b(b)]
    args += [pack_w(w_out1), pack_b(b_out1),
             pack_w(w_out2), pack_b(b_out2)]

    # x / out tiled over packed rows; every parameter is whole-array
    # VMEM-resident with a constant index_map (never re-fetched).
    in_specs = [pl.BlockSpec((tile_p, pack * in_dim), lambda i: (i, 0))]
    in_specs += [pl.BlockSpec(a.shape, lambda i: (0, 0)) for a in args[1:]]
    out_specs = pl.BlockSpec((tile_p, pack), lambda i: (i, 0))

    # Derive the VMEM limit from the actual footprint (double-buffered x/out,
    # resident params, a few live f32 activation tiles) instead of 32 MiB.
    lane_out = max(pack * in_dim, pack * 32)
    param_bytes = sum(a.size * a.dtype.itemsize for a in args[1:])
    vmem_est = (2 * tile_p * pack * in_dim * 2           # x double buffer (bf16)
                + 2 * tile_p * pack * 4                  # out double buffer (f32)
                + param_bytes
                + 6 * tile_p * lane_out * 4)             # live f32 intermediates
    vmem_limit = int(max(_round_up(vmem_est, 1 << 20), 16 << 20))

    flops = 2 * P_pad * (n_linear * (pack * in_dim) ** 2
                         + (pack * in_dim) * (pack * 32)
                         + (pack * 32) * pack)
    bytes_accessed = (xp.size * xp.dtype.itemsize + param_bytes + P_pad * pack * 4)

    out = pl.pallas_call(
        functools.partial(_mlp_kernel, n_linear),
        grid=grid,
        in_specs=in_specs,
        out_specs=out_specs,
        out_shape=jax.ShapeDtypeStruct((P_pad, pack), jnp.float32),
        compiler_params=pltpu.CompilerParams(
            dimension_semantics=("parallel",),           # megacore sharding on v7x
            vmem_limit_bytes=vmem_limit,
        ),
        cost_estimate=pl.CostEstimate(
            flops=int(flops), transcendentals=0,
            bytes_accessed=int(bytes_accessed)),
    )(*args)

    # (P_pad, pack) in row-major order is exactly rows 0..n_rows_pad-1, so the
    # module's reshape(1, -1) is a free wrapper reshape; drop row padding.
    return out.reshape(1, -1)[:, :N]


def _init_linear(key, fan_in, fan_out):
    """PyTorch-style Linear init: U(-1/sqrt(fan_in), 1/sqrt(fan_in)); weight
    stored already transposed as (fan_in, fan_out)."""
    kw, kb = jax.random.split(key)
    bound = 1.0 / jnp.sqrt(jnp.float32(fan_in))
    w = jax.random.uniform(kw, (fan_in, fan_out), jnp.float32, -bound, bound)
    b = jax.random.uniform(kb, (fan_out,), jnp.float32, -bound, bound)
    return w, b


def reference_mlp(x, lin_weights, lin_biases, w_out1, b_out1, w_out2, b_out2):
    h = x
    for w, b in zip(lin_weights, lin_biases):
        h = jnp.maximum(h @ w + b, 0.0)
    h = jnp.maximum(h @ w_out1 + b_out1, 0.0)
    h = h @ w_out2 + b_out2
    return h.reshape(1, -1)


if __name__ == "__main__":
    # Small shapes consistent with the module: N nodes, in_dim features.
    N, in_dim, n_linear = 8, 32, 2

    key = jax.random.PRNGKey(0)
    keys = jax.random.split(key, n_linear + 3)

    x = jax.random.normal(keys[0], (N, in_dim), jnp.float32)

    lin_weights, lin_biases = [], []
    for i in range(n_linear):
        w, b = _init_linear(keys[1 + i], in_dim, in_dim)
        lin_weights.append(w)
        lin_biases.append(b)

    w_out1, b_out1 = _init_linear(keys[1 + n_linear], in_dim, 32)
    w_out2, b_out2 = _init_linear(keys[2 + n_linear], 32, 1)

    # Single-tile path (tiny N).
    y = jax.block_until_ready(
        mlp_forward(x, lin_weights, lin_biases, w_out1, b_out1, w_out2, b_out2))
    y_ref = reference_mlp(x, lin_weights, lin_biases, w_out1, b_out1, w_out2, b_out2)
    assert y.shape == (1, N), y.shape
    # bf16 matmul operands -> looser tolerance vs the pure-f32 reference.
    assert jnp.allclose(y, y_ref, atol=5e-2, rtol=5e-2), (y, y_ref)

    # Multi-tile (grid >= 2) + row-padding + megacore-split path.
    N2 = 300
    x2 = jax.random.normal(keys[0], (N2, in_dim), jnp.float32)
    y2 = jax.block_until_ready(
        mlp_forward(x2, lin_weights, lin_biases, w_out1, b_out1, w_out2, b_out2))
    y2_ref = reference_mlp(x2, lin_weights, lin_biases, w_out1, b_out1, w_out2, b_out2)
    assert y2.shape == (1, N2), y2.shape
    assert jnp.allclose(y2, y2_ref, atol=5e-2, rtol=5e-2)

    print("KERNEL_OK")
</pallas_src>

<mosaic_0001>
module attributes {stable_mosaic.version = 11 : i64} {
  func.func @_mlp_kernel(%arg0: i32, %arg1: memref<8x128xbf16, #tpu.memory_space<vmem>>, %arg2: memref<128x128xbf16, #tpu.memory_space<vmem>>, %arg3: memref<1x128xf32, #tpu.memory_space<vmem>>, %arg4: memref<128x128xbf16, #tpu.memory_space<vmem>>, %arg5: memref<1x128xf32, #tpu.memory_space<vmem>>, %arg6: memref<128x128xbf16, #tpu.memory_space<vmem>>, %arg7: memref<1x128xf32, #tpu.memory_space<vmem>>, %arg8: memref<128x4xbf16, #tpu.memory_space<vmem>>, %arg9: memref<1x4xf32, #tpu.memory_space<vmem>>, %arg10: memref<8x4xf32, #tpu.memory_space<vmem>>) attributes {dimension_semantics = [#tpu.dimension_semantics<parallel>], iteration_bounds = array<i64: 1>, scalar_prefetch = 0 : i64, scratch_operands = 0 : i64, tpu.core_type = #tpu.core_type<tc>, window_params = [{transform_indices = @transform_0, window_bounds = array<i64: 8, 128>}, {pipeline_mode = #tpu.pipeline_mode<synchronous>, transform_indices = @transform_1, window_bounds = array<i64: 128, 128>}, {pipeline_mode = #tpu.pipeline_mode<synchronous>, transform_indices = @transform_2, window_bounds = array<i64: 1, 128>}, {pipeline_mode = #tpu.pipeline_mode<synchronous>, transform_indices = @transform_3, window_bounds = array<i64: 128, 128>}, {pipeline_mode = #tpu.pipeline_mode<synchronous>, transform_indices = @transform_4, window_bounds = array<i64: 1, 128>}, {pipeline_mode = #tpu.pipeline_mode<synchronous>, transform_indices = @transform_5, window_bounds = array<i64: 128, 128>}, {pipeline_mode = #tpu.pipeline_mode<synchronous>, transform_indices = @transform_6, window_bounds = array<i64: 1, 128>}, {pipeline_mode = #tpu.pipeline_mode<synchronous>, transform_indices = @transform_7, window_bounds = array<i64: 128, 4>}, {pipeline_mode = #tpu.pipeline_mode<synchronous>, transform_indices = @transform_8, window_bounds = array<i64: 1, 4>}, {transform_indices = @transform_9, window_bounds = array<i64: 8, 4>}]} {
    %c0 = arith.constant 0 : index
    %c0_0 = arith.constant 0 : index
    %0 = vector.load %arg1[%c0, %c0_0] : memref<8x128xbf16, #tpu.memory_space<vmem>>, vector<8x128xbf16>
    %c0_1 = arith.constant 0 : index
    %c0_2 = arith.constant 0 : index
    %1 = vector.load %arg2[%c0_1, %c0_2] : memref<128x128xbf16, #tpu.memory_space<vmem>>, vector<128x128xbf16>
    %c0_3 = arith.constant 0 : index
    %c0_4 = arith.constant 0 : index
    %2 = vector.load %arg3[%c0_3, %c0_4] : memref<1x128xf32, #tpu.memory_space<vmem>>, vector<1x128xf32>
    %cst = arith.constant dense<0.000000e+00> : vector<8x128xf32>
    %3 = tpu.matmul %0, %1, %cst {dimension_numbers = #tpu.dot_dimension_numbers<[1], [0], [0], [1], [0, 0, 1, 1], [], []>} : vector<8x128xbf16>, vector<128x128xbf16>, vector<8x128xf32> -> vector<8x128xf32>
    %4 = vector.broadcast %2 : vector<1x128xf32> to vector<8x128xf32>
    %5 = arith.addf %3, %4 : vector<8x128xf32>
    %cst_5 = arith.constant 0.000000e+00 : f32
    %6 = vector.broadcast %cst_5 : f32 to vector<8x128xf32>
    %7 = arith.maximumf %5, %6 : vector<8x128xf32>
    %8 = arith.truncf %7 : vector<8x128xf32> to vector<8x128xbf16>
    %c0_6 = arith.constant 0 : index
    %c0_7 = arith.constant 0 : index
    %9 = vector.load %arg4[%c0_6, %c0_7] : memref<128x128xbf16, #tpu.memory_space<vmem>>, vector<128x128xbf16>
    %c0_8 = arith.constant 0 : index
    %c0_9 = arith.constant 0 : index
    %10 = vector.load %arg5[%c0_8, %c0_9] : memref<1x128xf32, #tpu.memory_space<vmem>>, vector<1x128xf32>
    %cst_10 = arith.constant dense<0.000000e+00> : vector<8x128xf32>
    %11 = tpu.matmul %8, %9, %cst_10 {dimension_numbers = #tpu.dot_dimension_numbers<[1], [0], [0], [1], [0, 0, 1, 1], [], []>} : vector<8x128xbf16>, vector<128x128xbf16>, vector<8x128xf32> -> vector<8x128xf32>
    %12 = vector.broadcast %10 : vector<1x128xf32> to vector<8x128xf32>
    %13 = arith.addf %11, %12 : vector<8x128xf32>
    %cst_11 = arith.constant 0.000000e+00 : f32
    %14 = vector.broadcast %cst_11 : f32 to vector<8x128xf32>
    %15 = arith.maximumf %13, %14 : vector<8x128xf32>
    %16 = arith.truncf %15 : vector<8x128xf32> to vector<8x128xbf16>
    %c0_12 = arith.constant 0 : index
    %c0_13 = arith.constant 0 : index
    %17 = vector.load %arg6[%c0_12, %c0_13] : memref<128x128xbf16, #tpu.memory_space<vmem>>, vector<128x128xbf16>
    %c0_14 = arith.constant 0 : index
    %c0_15 = arith.constant 0 : index
    %18 = vector.load %arg7[%c0_14, %c0_15] : memref<1x128xf32, #tpu.memory_space<vmem>>, vector<1x128xf32>
    %cst_16 = arith.constant dense<0.000000e+00> : vector<8x128xf32>
    %19 = tpu.matmul %16, %17, %cst_16 {dimension_numbers = #tpu.dot_dimension_numbers<[1], [0], [0], [1], [0, 0, 1, 1], [], []>} : vector<8x128xbf16>, vector<128x128xbf16>, vector<8x128xf32> -> vector<8x128xf32>
    %20 = vector.broadcast %18 : vector<1x128xf32> to vector<8x128xf32>
    %21 = arith.addf %19, %20 : vector<8x128xf32>
    %cst_17 = arith.constant 0.000000e+00 : f32
    %22 = vector.broadcast %cst_17 : f32 to vector<8x128xf32>
    %23 = arith.maximumf %21, %22 : vector<8x128xf32>
    %24 = arith.truncf %23 : vector<8x128xf32> to vector<8x128xbf16>
    %c0_18 = arith.constant 0 : index
    %c0_19 = arith.constant 0 : index
    %25 = vector.load %arg8[%c0_18, %c0_19] : memref<128x4xbf16, #tpu.memory_space<vmem>>, vector<128x4xbf16>
    %c0_20 = arith.constant 0 : index
    %c0_21 = arith.constant 0 : index
    %26 = vector.load %arg9[%c0_20, %c0_21] : memref<1x4xf32, #tpu.memory_space<vmem>>, vector<1x4xf32>
    %cst_22 = arith.constant dense<0.000000e+00> : vector<8x4xf32>
    %27 = tpu.matmul %24, %25, %cst_22 {dimension_numbers = #tpu.dot_dimension_numbers<[1], [0], [0], [1], [0, 0, 1, 1], [], []>} : vector<8x128xbf16>, vector<128x4xbf16>, vector<8x4xf32> -> vector<8x4xf32>
    %28 = vector.broadcast %26 : vector<1x4xf32> to vector<8x4xf32>
    %29 = arith.addf %27, %28 : vector<8x4xf32>
    %c0_23 = arith.constant 0 : index
    %c0_24 = arith.constant 0 : index
    %30 = vector.load %arg10[%c0_23, %c0_24] : memref<8x4xf32, #tpu.memory_space<vmem>>, vector<8x4xf32>
    tpu.vector_store %arg10[%c0_23, %c0_24], %29 {strides = array<i32>} : memref<8x4xf32, #tpu.memory_space<vmem>>, vector<8x4xf32>,
    return
  }
  func.func @transform_0(%arg0: i32) -> (i32, i32) {
    %c0_i32 = arith.constant 0 : i32
    %c0_i32_0 = arith.constant 0 : i32
    return %arg0, %c0_i32 : i32, i32
  }
  func.func @transform_1(%arg0: i32) -> (i32, i32) {
    %c0_i32 = arith.constant 0 : i32
    %c0_i32_0 = arith.constant 0 : i32
    %c0_i32_1 = arith.constant 0 : i32
    return %c0_i32, %c0_i32_0 : i32, i32
  }
  func.func @transform_2(%arg0: i32) -> (i32, i32) {
    %c0_i32 = arith.constant 0 : i32
    %c0_i32_0 = arith.constant 0 : i32
    %c0_i32_1 = arith.constant 0 : i32
    return %c0_i32, %c0_i32_0 : i32, i32
  }
  func.func @transform_3(%arg0: i32) -> (i32, i32) {
    %c0_i32 = arith.constant 0 : i32
    %c0_i32_0 = arith.constant 0 : i32
    %c0_i32_1 = arith.constant 0 : i32
    return %c0_i32, %c0_i32_0 : i32, i32
  }
  func.func @transform_4(%arg0: i32) -> (i32, i32) {
    %c0_i32 = arith.constant 0 : i32
    %c0_i32_0 = arith.constant 0 : i32
    %c0_i32_1 = arith.constant 0 : i32
    return %c0_i32, %c0_i32_0 : i32, i32
  }
  func.func @transform_5(%arg0: i32) -> (i32, i32) {
    %c0_i32 = arith.constant 0 : i32
    %c0_i32_0 = arith.constant 0 : i32
    %c0_i32_1 = arith.constant 0 : i32
    return %c0_i32, %c0_i32_0 : i32, i32
  }
  func.func @transform_6(%arg0: i32) -> (i32, i32) {
    %c0_i32 = arith.constant 0 : i32
    %c0_i32_0 = arith.constant 0 : i32
    %c0_i32_1 = arith.constant 0 : i32
    return %c0_i32, %c0_i32_0 : i32, i32
  }
  func.func @transform_7(%arg0: i32) -> (i32, i32) {
    %c0_i32 = arith.constant 0 : i32
    %c0_i32_0 = arith.constant 0 : i32
    %c0_i32_1 = arith.constant 0 : i32
    return %c0_i32, %c0_i32_0 : i32, i32
  }
  func.func @transform_8(%arg0: i32) -> (i32, i32) {
    %c0_i32 = arith.constant 0 : i32
    %c0_i32_0 = arith.constant 0 : i32
    %c0_i32_1 = arith.constant 0 : i32
    return %c0_i32, %c0_i32_0 : i32, i32
  }
  func.func @transform_9(%arg0: i32) -> (i32, i32) {
    %c0_i32 = arith.constant 0 : i32
    %c0_i32_0 = arith.constant 0 : i32
    return %arg0, %c0_i32 : i32, i32
  }
}

</mosaic_0001>

<bundles_post_ra>
// kernel: tpu_custom_call.1
= control target key start
LH: loop header
LB: loop body
LE: loop exit
PB: predicated region body
PF: predicated region fallthrough
CT: control target
= control target key end

     0   :  { %14 = vsyncpa [#allocation3], 0  ;;  %s944_s0 = inlined_call_operand.vmem [shape: bf16[8,128], index: 0, kind: input, shape index: {}]   ;;  %s945_s1 = inlined_call_operand.vmem [shape: bf16[128,128], index: 1, kind: input, shape index: {}]   ;;  %s946_s2 = inlined_call_operand.vmem [shape: f32[1,128], index: 2, kind: input, shape index: {}]   ;;  %s947_s3 = inlined_call_operand.hbm [shape: bf16[128,128], index: 3, kind: input, shape index: {}]   ;;  %s948_s4 = inlined_call_operand.vmem [shape: f32[1,128], index: 4, kind: input, shape index: {}]   ;;  %s949_s5 = inlined_call_operand.hbm [shape: bf16[128,128], index: 5, kind: input, shape index: {}]   ;;  %s950_s6 = inlined_call_operand.vmem [shape: f32[1,128], index: 6, kind: input, shape index: {}]   ;;  %s951_s7 = inlined_call_operand.vmem [shape: bf16[128,4], index: 7, kind: input, shape index: {}]   ;;  %s952_s8 = inlined_call_operand.vmem [shape: f32[1,4], index: 8, kind: input, shape index: {}]   ;;  %s953_s9 = inlined_call_operand.vmem [shape: f32[8,4], index: 9, kind: output, shape index: {}]  }
   0x1   :  { %15 = vsyncpa [#allocation5], 0  ;;  %s758_s30 = smov [#allocation2]   ;;  %s710_s13 = scalar_lea.hbm %s947_s3, 1024 }
   0x2   :  { %s27_s10 = sshll.u32 %s758_s30, 4  ;;  %p711_p0 = scmp.ne.s32.totalorder %s947_s3, %s710_s13  ;;  %s28_s10 = int_to_ptr.vmem [resolvable:$true] %s27_s10 }
   0x3   :  { %p714_p1 = scmp.lt.u32.totalorder %s710_s13, %s947_s3 }
   0x5   :  { %p716_p2 = pnand %p714_p1, %p711_p0 }
   0x7   :  { %719 = shalt.err (!%p716_p2)
}
   0x8   :  { %s720_s18 = scalar_lea.vmem %s28_s10, 1024  ;;  %p725_p4 = scmp.lt.s32.totalorder %s28_s10, %s28_s10 }
   0x9   :  { %p721_p3 = scmp.ne.s32.totalorder %s28_s10, %s720_s18  ;;  %p726_p5 = scmp.lt.s32.totalorder %s720_s18, %s720_s18 }
   0xb   :  { %p727_p6 = por %p726_p5, %p725_p4 }
   0xd   :  { %p728_p7 = pnand %p727_p6, %p721_p3 }
   0xf   :  { %731 = shalt.err (!%p728_p7)
}
  0x10   :  { %s759_s19 = smov 64   ;;  %s760_s20 = smov 4  }
  0x11   :  { %33 = dma.hbm_to_vmem [thread:$0]  %s947_s3, 1024, %s28_s10, [#allocation3], %s759_s19, %s759_s19, %s760_s20  }
  0x12   :  { %s761_s23 = smov [#allocation4]   ;;  %s732_s27 = scalar_lea.hbm %s949_s5, 1024 }
  0x13   :  { %s41_s24 = sshll.u32 %s761_s23, 4  ;;  %p733_p8 = scmp.ne.s32.totalorder %s949_s5, %s732_s27  ;;  %s42_s24 = int_to_ptr.vmem [resolvable:$true] %s41_s24 }
  0x14   :  { %p736_p9 = scmp.lt.u32.totalorder %s732_s27, %s949_s5 }
  0x16   :  { %p738_p10 = pnand %p736_p9, %p733_p8 }
  0x18   :  { %741 = shalt.err (!%p738_p10)
}
  0x19   :  { %s742_s12 = scalar_lea.vmem %s42_s24, 1024  ;;  %p747_p12 = scmp.lt.s32.totalorder %s42_s24, %s42_s24 }
  0x1a   :  { %p743_p11 = scmp.ne.s32.totalorder %s42_s24, %s742_s12  ;;  %p748_p13 = scmp.lt.s32.totalorder %s742_s12, %s742_s12 }
  0x1c   :  { %p749_p0 = por %p748_p13, %p747_p12 }
  0x1e   :  { %p750_p1 = pnand %p749_p0, %p743_p11 }
  0x20   :  { %753 = shalt.err (!%p750_p1)
}
  0x21   :  { %47 = dma.hbm_to_vmem [thread:$0]  %s949_s5, 1024, %s42_s24, [#allocation5], %s759_s19, %s759_s19, %s760_s20  }
  0x22   :  { %754 = dma.done.wait [#allocation3], 1024  }
  0x23   :  { %755 = vsyncadd [#allocation3], 4294966272 }
  0x24   :  { %756 = dma.done.wait [#allocation5], 1024  }
  0x25   :  { %757 = vsyncadd [#allocation5], 4294966272  ;;  %v762_v0 = vmov 0.0   ;;  %vm763_vm0 = vmmov 0   ;;  %v678_v1 = vld [vmem:[%s945_s1] sm:$0xff]   ;;  %v679_v2 = vld [vmem:[%s945_s1 + $0x8] sm:$0xff]  }
  0x26   :  { %592 = vmatprep.subr.bf16.mxu0 %v762_v0  ;;  %608 = vmatprep.mubr.msk.bf16.mxu0 %vm763_vm0, %v762_v0  ;;  %v680_v3 = vld [vmem:[%s945_s1 + $0x10] sm:$0xff]   ;;  %v686_v4 = vld [vmem:[#allocation2] sm:$0xff]   ;;  %v681_v5 = vld [vmem:[%s945_s1 + $0x18] sm:$0xff]   ;;  %vm512_vm1 = vcmask 31744  }
  0x27   :  { %612 = vmatprep.subr.bf16.mxu1 %v762_v0  ;;  %628 = vmatprep.mubr.msk.bf16.mxu1 %vm763_vm0, %v762_v0  ;;  %v687_v6 = vld [vmem:[#allocation2 + $0x8] sm:$0xff]   ;;  %v682_v7 = vld [vmem:[%s945_s1 + $0x20] sm:$0xff]   ;;  %v688_v8 = vld [vmem:[#allocation2 + $0x10] sm:$0xff]  }
  0x28   :  { %593 = vmatpush3.bf16.msra.mxu0 %v678_v1  ;;  %613 = vmatpush3.bf16.msra.mxu1 %v686_v4  ;;  %v683_v9 = vld [vmem:[%s945_s1 + $0x28] sm:$0xff]   ;;  %v689_v10 = vld [vmem:[#allocation2 + $0x18] sm:$0xff]   ;;  %v684_v11 = vld [vmem:[%s945_s1 + $0x30] sm:$0xff]  }
  0x29   :  { %594 = vmatprep.subr.bf16.mxu0 %v762_v0  ;;  %614 = vmatprep.subr.bf16.mxu1 %v762_v0  ;;  %v690_v12 = vld [vmem:[#allocation2 + $0x20] sm:$0xff]   ;;  %v685_v13 = vld [vmem:[%s945_s1 + $0x38] sm:$0xff]   ;;  %v691_v14 = vld [vmem:[#allocation2 + $0x28] sm:$0xff]  }
  0x2a   :  { %v61_v15 = vld [vmem:[%s944_s0] sm:$0xf]  ;;  %v692_v16 = vld [vmem:[#allocation2 + $0x30] sm:$0xff]   ;;  %v693_v17 = vld [vmem:[#allocation2 + $0x38] sm:$0xff]  }
  0x2b   :  { %v694_v18 = vld [vmem:[#allocation4] sm:$0xff]   ;;  %v695_v19 = vld [vmem:[#allocation4 + $0x8] sm:$0xff]   ;;  %v696_v20 = vld [vmem:[#allocation4 + $0x10] sm:$0xff]  }
  0x2c   :  { %595 = vmatpush3.bf16.msra.mxu0 %v679_v2  ;;  %615 = vmatpush3.bf16.msra.mxu1 %v687_v6  ;;  %v697_v21 = vld [vmem:[#allocation4 + $0x18] sm:$0xff]   ;;  %v698_v22 = vld [vmem:[#allocation4 + $0x20] sm:$0xff]   ;;  %v699_v23 = vld [vmem:[#allocation4 + $0x28] sm:$0xff]  }
  0x2d   :  { %596 = vmatprep.subr.bf16.mxu0 %v762_v0  ;;  %616 = vmatprep.subr.bf16.mxu1 %v762_v0  ;;  %v520_v24 = vld [vmem:[%s946_s2] ss:$0 sm:$0xff]  ;;  %v700_v32 = vld [vmem:[#allocation4 + $0x30] sm:$0xff]   ;;  %v701_v33 = vld [vmem:[#allocation4 + $0x38] sm:$0xff]  }
  0x2e   :  { %v702_v34 = vld [vmem:[%s951_s7] sm:$0xff]   ;;  %v703_v35 = vld [vmem:[%s951_s7 + $0x8] sm:$0xff]   ;;  %v704_v36 = vld [vmem:[%s951_s7 + $0x10] sm:$0xff]  }
  0x2f   :  { %v705_v37 = vld [vmem:[%s951_s7 + $0x18] sm:$0xff]   ;;  %v706_v38 = vld [vmem:[%s951_s7 + $0x20] sm:$0xff]   ;;  %v707_v39 = vld [vmem:[%s951_s7 + $0x28] sm:$0xff]  }
  0x30   :  { %597 = vmatpush3.bf16.msra.mxu0 %v680_v3  ;;  %617 = vmatpush3.bf16.msra.mxu1 %v688_v8  ;;  %v529_v40 = vld [vmem:[%s948_s4] ss:$0 sm:$0xff]  ;;  %v708_v48 = vld [vmem:[%s951_s7 + $0x30] sm:$0xff]   ;;  %v709_v49 = vld [vmem:[%s951_s7 + $0x38] sm:$0xff]  }
  0x31   :  { %598 = vmatprep.subr.bf16.mxu0 %v762_v0  ;;  %618 = vmatprep.subr.bf16.mxu1 %v762_v0  ;;  %v538_v50 = vld [vmem:[%s950_s6] ss:$0 sm:$0xff] }
  0x32   :  { %v547_v58 = vld [vmem:[%s952_s8] ss:$0 sm:$0xff] }
  0x34   :  { %599 = vmatpush3.bf16.msra.mxu0 %v681_v5  ;;  %619 = vmatpush3.bf16.msra.mxu1 %v689_v10 }
  0x35   :  { %600 = vmatprep.subr.bf16.mxu0 %v762_v0  ;;  %620 = vmatprep.subr.bf16.mxu1 %v762_v0 }
  0x38   :  { %601 = vmatpush3.bf16.msra.mxu0 %v682_v7  ;;  %621 = vmatpush3.bf16.msra.mxu1 %v690_v12 }
  0x39   :  { %602 = vmatprep.subr.bf16.mxu0 %v762_v0  ;;  %622 = vmatprep.subr.bf16.mxu1 %v762_v0 }
  0x3c   :  { %603 = vmatpush3.bf16.msra.mxu0 %v683_v9  ;;  %623 = vmatpush3.bf16.msra.mxu1 %v691_v14 }
  0x3d   :  { %604 = vmatprep.subr.bf16.mxu0 %v762_v0  ;;  %624 = vmatprep.subr.bf16.mxu1 %v762_v0 }
  0x40   :  { %605 = vmatpush3.bf16.msra.mxu0 %v684_v11  ;;  %625 = vmatpush3.bf16.msra.mxu1 %v692_v16 }
  0x41   :  { %606 = vmatprep.subr.bf16.mxu0 %v762_v0  ;;  %626 = vmatprep.subr.bf16.mxu1 %v762_v0 }
  0x44   :  { %607 = vmatpush3.bf16.msra.mxu0 %v685_v13  ;;  %627 = vmatpush3.bf16.msra.mxu1 %v693_v17 }
  0x45   :  { %632 = vmatprep.subr.bf16.mxu0 %v762_v0  ;;  %652 = vmatprep.subr.bf16.mxu1 %v762_v0 }
  0x47   :  { %609 = vmatmul.mubr.bf16.vlgmr.msra.gmra.mrb[0].mxu0 %v61_v15 }
  0x48   :  { %648 = vmatprep.mubr.msk.bf16.mxu0 %vm763_vm0, %v762_v0  ;;  %633 = vmatpush3.bf16.msra.mxu0 %v694_v18 }
  0x49   :  { %634 = vmatprep.subr.bf16.mxu0 %v762_v0 }
  0x4c   :  { %635 = vmatpush3.bf16.msra.mxu0 %v695_v19 }
  0x4d   :  { %636 = vmatprep.subr.bf16.mxu0 %v762_v0 }
  0x50   :  { %637 = vmatpush3.bf16.msra.mxu0 %v696_v20 }
  0x51   :  { %638 = vmatprep.subr.bf16.mxu0 %v762_v0 }
  0x54   :  { %639 = vmatpush3.bf16.msra.mxu0 %v697_v21 }
  0x55   :  { %640 = vmatprep.subr.bf16.mxu0 %v762_v0 }
  0x58   :  { %641 = vmatpush3.bf16.msra.mxu0 %v698_v22 }
  0x59   :  { %642 = vmatprep.subr.bf16.mxu0 %v762_v0 }
  0x5c   :  { %643 = vmatpush3.bf16.msra.mxu0 %v699_v23 }
  0x5d   :  { %644 = vmatprep.subr.bf16.mxu0 %v762_v0 }
  0x60   :  { %645 = vmatpush3.bf16.msra.mxu0 %v700_v32 }
  0x61   :  { %646 = vmatprep.subr.bf16.mxu0 %v762_v0 }
  0x64   :  { %647 = vmatpush3.bf16.msra.mxu0 %v701_v33 }
 0x11a   :  { %v167_v25 = vpop.f32.mrb[0].mxu0 }
 0x11b   :  { %v168_v26 = vadd.f32 %v520_v24, %v167_v25  ;;  %v610_v27 = vpop.f32.mrb[1].mxu0 }
 0x11c   :  { %v170_v28 = vpop.f32.mrb[2].mxu0 }
 0x11d   :  { %v173_v29 = vmax.f32 %v168_v26, 0.0  ;;  %v611_v30 = vpop.f32.mrb[3].mxu0 }
 0x11f   :  { %v174_v31 = vpack.c.bf16 %v173_v29, %v173_v29 }
 0x121   :  { %629 = vmatmul.mubr.bf16.vlgmr.msra.gmra.mrb[0].mxu1 %v174_v31 }
 0x122   :  { %668 = vmatprep.mubr.msk.bf16.mxu1 %vm763_vm0, %v762_v0  ;;  %653 = vmatpush3.bf16.msra.mxu1 %v702_v34 }
 0x123   :  { %654 = vmatprep.subr.bf16.mxu1 %v762_v0 }
 0x126   :  { %655 = vmatpush3.bf16.msra.mxu1 %v703_v35 }
 0x127   :  { %656 = vmatprep.subr.bf16.mxu1 %v762_v0 }
 0x12a   :  { %657 = vmatpush3.bf16.msra.mxu1 %v704_v36 }
 0x12b   :  { %658 = vmatprep.subr.bf16.mxu1 %v762_v0 }
 0x12e   :  { %659 = vmatpush3.bf16.msra.mxu1 %v705_v37 }
 0x12f   :  { %660 = vmatprep.subr.bf16.mxu1 %v762_v0 }
 0x132   :  { %661 = vmatpush3.bf16.msra.mxu1 %v706_v38 }
 0x133   :  { %662 = vmatprep.subr.bf16.mxu1 %v762_v0 }
 0x136   :  { %663 = vmatpush3.bf16.msra.mxu1 %v707_v39 }
 0x137   :  { %664 = vmatprep.subr.bf16.mxu1 %v762_v0 }
 0x13a   :  { %665 = vmatpush3.bf16.msra.mxu1 %v708_v48 }
 0x13b   :  { %666 = vmatprep.subr.bf16.mxu1 %v762_v0 }
 0x13e   :  { %667 = vmatpush3.bf16.msra.mxu1 %v709_v49 }
 0x1f4   :  { %v280_v41 = vpop.f32.mrb[0].mxu1 }
 0x1f5   :  { %v281_v42 = vadd.f32 %v529_v40, %v280_v41  ;;  %v630_v43 = vpop.f32.mrb[1].mxu1 }
 0x1f6   :  { %v283_v44 = vpop.f32.mrb[2].mxu1 }
 0x1f7   :  { %v286_v45 = vmax.f32 %v281_v42, 0.0  ;;  %v631_v46 = vpop.f32.mrb[3].mxu1 }
 0x1f9   :  { %v287_v47 = vpack.c.bf16 %v286_v45, %v286_v45 }
 0x1fb   :  { %649 = vmatmul.mubr.bf16.vlgmr.msra.gmra.mrb[4].mxu0 %v287_v47 }
 0x2ce   :  { %v393_v51 = vpop.f32.mrb[4].mxu0 }
 0x2cf   :  { %v394_v52 = vadd.f32 %v538_v50, %v393_v51  ;;  %v650_v53 = vpop.f32.mrb[5].mxu0 }
 0x2d0   :  { %v396_v54 = vpop.f32.mrb[6].mxu0 }
 0x2d1   :  { %v399_v55 = vmax.f32 %v394_v52, 0.0  ;;  %v651_v56 = vpop.f32.mrb[7].mxu0 }
 0x2d3   :  { %v400_v57 = vpack.c.bf16 %v399_v55, %v399_v55 }
 0x2d5   :  { %669 = vmatmul.mubr.bf16.vlgmr.msra.gmra.mrb[4].mxu1 %v400_v57 }
 0x3a8   :  { %v506_v59 = vpop.f32.mrb[4].mxu1 }
 0x3a9   :  { %v507_v60 = vadd.f32 %v547_v58, %v506_v59  ;;  %v670_v61 = vpop.f32.mrb[5].mxu1 }
 0x3aa   :  { %v509_v62 = vpop.f32.mrb[6].mxu1 }
 0x3ab   :  { %513 = vst.msk [vmem:[%s953_s9] sm:$0xff] %vm512_vm1, %v507_v60  ;;  %v671_v63 = vpop.f32.mrb[7].mxu1 }
 0x3ac   :  { %518 = vsyncpa [#allocation3], 1 }
 0x3ad   :  { %519 = vsyncpa [#allocation5], 1 }

</bundles_post_ra>
